<compile_context>
chip_gen: v5e
topology: v5e:2x2
jax: 0.10.0
libtpu: 0.0.40
codegen_flags: <defaults>
</compile_context>

<pallas_src>
import jax
import jax.numpy as jnp
from jax.experimental import pallas as pl
from jax.experimental.pallas import tpu as pltpu

IN_FEATURES = 10
OUT_FEATURES = 5
BLOCK_ROWS = 4096  # batch tile; well past the ~85% roofline knee, tiny vs VMEM


def _round_up(n: int, m: int) -> int:
    return ((n + m - 1) // m) * m


def _linear_kernel(x_ref, w_ref, b_ref, o_ref):
    # x_ref: (TB, IN), w_ref: (IN, OUT), b_ref: (1, OUT), o_ref: (TB, OUT)
    acc = jnp.dot(x_ref[...], w_ref[...], preferred_element_type=jnp.float32)
    o_ref[...] = (acc + b_ref[...]).astype(o_ref.dtype)


def net_forward(x, w_t, b2d, *, block_rows=BLOCK_ROWS):
    """x: (B, 10) f32, w_t: (10, 5) f32 (pre-transposed), b2d: (1, 5) f32 -> (B, 5)."""
    B = x.shape[0]
    # Tile size: at most block_rows, at least the (sublane-aligned) batch itself.
    TB = min(block_rows, _round_up(B, 8))
    B_pad = _round_up(B, TB)
    x_p = x if B_pad == B else jnp.pad(x, ((0, B_pad - B), (0, 0)))
    grid = (B_pad // TB,)

    out = pl.pallas_call(
        _linear_kernel,
        out_shape=jax.ShapeDtypeStruct((B_pad, OUT_FEATURES), x.dtype),
        grid=grid,
        in_specs=[
            pl.BlockSpec((TB, IN_FEATURES), lambda i: (i, 0)),          # batch tile
            pl.BlockSpec((IN_FEATURES, OUT_FEATURES), lambda i: (0, 0)),  # resident W^T
            pl.BlockSpec((1, OUT_FEATURES), lambda i: (0, 0)),            # resident bias
        ],
        out_specs=pl.BlockSpec((TB, OUT_FEATURES), lambda i: (i, 0)),
        compiler_params=pltpu.CompilerParams(
            # Batch tiles are independent -> shard across TCs on v7x.
            dimension_semantics=("parallel",),
        ),
        cost_estimate=pl.CostEstimate(
            flops=2 * B_pad * IN_FEATURES * OUT_FEATURES,
            transcendentals=0,
            bytes_accessed=4 * (
                B_pad * IN_FEATURES
                + IN_FEATURES * OUT_FEATURES
                + OUT_FEATURES
                + B_pad * OUT_FEATURES
            ),
        ),
    )(x_p, w_t, b2d)

    return out if B_pad == B else out[:B]


if __name__ == "__main__":
    key = jax.random.PRNGKey(0)
    k_x, k_w, k_b = jax.random.split(key, 3)

    batch = 2
    # Deterministic parameter init (shapes from nn.Linear(10, 5)).
    bound = 1.0 / (IN_FEATURES ** 0.5)
    weight = jax.random.uniform(
        k_w, (OUT_FEATURES, IN_FEATURES), jnp.float32, -bound, bound
    )
    bias = jax.random.uniform(
        k_b, (OUT_FEATURES,), jnp.float32, -bound, bound
    )
    x = jax.random.normal(k_x, (batch, IN_FEATURES), jnp.float32)

    # "Parameter init time" layout prep — done once, not per forward call.
    w_t = jnp.asarray(weight.T)                  # (IN, OUT)
    b2d = jnp.asarray(bias).reshape(1, OUT_FEATURES)

    out = net_forward(x, w_t, b2d)
    out = jax.block_until_ready(out)

    # Cross-check against plain-JAX reference of the same math.
    ref = x @ weight.T + bias
    assert out.shape == (batch, OUT_FEATURES)
    assert jnp.allclose(out, ref, atol=1e-5, rtol=1e-5)

    print("KERNEL_OK")
</pallas_src>

<mosaic_0001>
module attributes {stable_mosaic.version = 11 : i64} {
  func.func @_linear_kernel(%arg0: i32, %arg1: memref<8x10xf32, #tpu.memory_space<vmem>>, %arg2: memref<10x5xf32, #tpu.memory_space<vmem>>, %arg3: memref<1x5xf32, #tpu.memory_space<vmem>>, %arg4: memref<8x5xf32, #tpu.memory_space<vmem>>) attributes {dimension_semantics = [#tpu.dimension_semantics<parallel>], iteration_bounds = array<i64: 1>, scalar_prefetch = 0 : i64, scratch_operands = 0 : i64, tpu.core_type = #tpu.core_type<tc>, window_params = [{transform_indices = @transform_0, window_bounds = array<i64: 8, 10>}, {pipeline_mode = #tpu.pipeline_mode<synchronous>, transform_indices = @transform_1, window_bounds = array<i64: 10, 5>}, {pipeline_mode = #tpu.pipeline_mode<synchronous>, transform_indices = @transform_2, window_bounds = array<i64: 1, 5>}, {transform_indices = @transform_3, window_bounds = array<i64: 8, 5>}]} {
    %c0 = arith.constant 0 : index
    %c0_0 = arith.constant 0 : index
    %0 = vector.load %arg1[%c0, %c0_0] : memref<8x10xf32, #tpu.memory_space<vmem>>, vector<8x10xf32>
    %c0_1 = arith.constant 0 : index
    %c0_2 = arith.constant 0 : index
    %1 = vector.load %arg2[%c0_1, %c0_2] : memref<10x5xf32, #tpu.memory_space<vmem>>, vector<10x5xf32>
    %cst = arith.constant dense<0.000000e+00> : vector<8x5xf32>
    %2 = tpu.matmul %0, %1, %cst {dimension_numbers = #tpu.dot_dimension_numbers<[1], [0], [0], [1], [0, 0, 1, 1], [], []>} : vector<8x10xf32>, vector<10x5xf32>, vector<8x5xf32> -> vector<8x5xf32>
    %c0_3 = arith.constant 0 : index
    %c0_4 = arith.constant 0 : index
    %3 = vector.load %arg3[%c0_3, %c0_4] : memref<1x5xf32, #tpu.memory_space<vmem>>, vector<1x5xf32>
    %4 = vector.broadcast %3 : vector<1x5xf32> to vector<8x5xf32>
    %5 = arith.addf %2, %4 : vector<8x5xf32>
    %c0_5 = arith.constant 0 : index
    %c0_6 = arith.constant 0 : index
    %6 = vector.load %arg4[%c0_5, %c0_6] : memref<8x5xf32, #tpu.memory_space<vmem>>, vector<8x5xf32>
    tpu.vector_store %arg4[%c0_5, %c0_6], %5 {strides = array<i32>} : memref<8x5xf32, #tpu.memory_space<vmem>>, vector<8x5xf32>,
    return
  }
  func.func @transform_0(%arg0: i32) -> (i32, i32) {
    %c0_i32 = arith.constant 0 : i32
    %c0_i32_0 = arith.constant 0 : i32
    return %arg0, %c0_i32 : i32, i32
  }
  func.func @transform_1(%arg0: i32) -> (i32, i32) {
    %c0_i32 = arith.constant 0 : i32
    %c0_i32_0 = arith.constant 0 : i32
    %c0_i32_1 = arith.constant 0 : i32
    return %c0_i32, %c0_i32_0 : i32, i32
  }
  func.func @transform_2(%arg0: i32) -> (i32, i32) {
    %c0_i32 = arith.constant 0 : i32
    %c0_i32_0 = arith.constant 0 : i32
    %c0_i32_1 = arith.constant 0 : i32
    return %c0_i32, %c0_i32_0 : i32, i32
  }
  func.func @transform_3(%arg0: i32) -> (i32, i32) {
    %c0_i32 = arith.constant 0 : i32
    %c0_i32_0 = arith.constant 0 : i32
    return %arg0, %c0_i32 : i32, i32
  }
}

</mosaic_0001>

<bundles_post_ra>
// kernel: tpu_custom_call.1
= control target key start
LH: loop header
LB: loop body
LE: loop exit
PB: predicated region body
PF: predicated region fallthrough
CT: control target
= control target key end

     0   :  { %vm26_vm0 = vcmask 1041408   ;;  %vm22_vm1 = vcmask 80896   ;;  %s134_s0 = inlined_call_operand.vmem [shape: f32[8,10], index: 0, kind: input, shape index: {}]   ;;  %s135_s1 = inlined_call_operand.vmem [shape: f32[10,5], index: 1, kind: input, shape index: {}]   ;;  %s136_s2 = inlined_call_operand.vmem [shape: f32[1,5], index: 2, kind: input, shape index: {}]   ;;  %s137_s3 = inlined_call_operand.hbm [shape: f32[8,5], index: 3, kind: output, shape index: {}]  }
   0x1   :  { %v17_v0 = vld [vmem:[%s135_s1 + $0x8] sm:$0x3]  ;;  %v16_v1 = vld [vmem:[%s135_s1] sm:$0xff] }
   0x2   :  { %68 = vmatpush.msk.msra.mxu0 %vm26_vm0, %v17_v0  ;;  %v15_v2 = vld [vmem:[%s134_s0] sm:$0xff] }
   0x3   :  { %8 = vsyncpa [#allocation3], 0  ;;  %v71_v3 = vld [vmem:[%s136_s2] ss:$0 sm:$0xff]  ;;  %s98_s20 = smov [#allocation2]   ;;  %s59_s24 = sshll.u32 %s137_s3, 4  ;;  %s60_s24 = int_to_ptr.hbm [resolvable:$true] %s59_s24 }
   0x4   :  { %45 = vmatpush.msra.mxu0 %v16_v1  ;;  %s57_s21 = sshll.u32 %s98_s20, 4  ;;  %vm50_vm2 = vcmask 39936   ;;  %s58_s21 = int_to_ptr.vmem [resolvable:$true] %s57_s21 }
   0x5   :  { %69 = vmatmul.msk.f32.vlgmr.msra.gmra.mxu0 %vm22_vm1, %v15_v2 }
  0x82   :  { %v47_v4 = vpop.f32.mrf.mxu0 }
  0x83   :  { %v48_v5 = vadd.f32 %v71_v3, %v47_v4 }
  0x85   :  { %51 = vst.msk [vmem:[#allocation2] sm:$0xff] %vm50_vm2, %v48_v5 }
  0x86   :  { %62 = dma.vmem_to_hbm [thread:$0]  %s58_s21, 128, %s60_s24, [#allocation3]  }
  0x87   :  { %96 = dma.done.wait [#allocation3], 128  }
  0x88   :  { %97 = vsyncadd [#allocation3], 4294967168 }
  0x89   :  { %67 = vsyncpa [#allocation3], 1 }

</bundles_post_ra>
